<compile_context>
chip_gen: v7x
topology: tpu7x:2x2x1
jax: 0.10.0
libtpu: 0.0.40
codegen_flags: <defaults>
</compile_context>

<pallas_src>
import jax
import jax.numpy as jnp
from jax.experimental import pallas as pl
from jax.experimental.pallas import tpu as pltpu


_INV_SQRT2 = 0.7071067811865476


def _gelu_exact(x):
    # nn.GELU() default is the exact (erf) formulation.
    return 0.5 * x * (1.0 + jax.lax.erf(x * _INV_SQRT2))


# ---------------- fused kernel ------------------------------------------------


def _pos_extraction_kernel(x_ref, w1_ref, b1_ref, w2_ref, b2_ref, o_ref):
    """All ConvBNReLURes1D blocks on one channel-major [C, TN] tile.

    x_ref : [1, C, TN]        position tile (N on lanes, C on sublanes)
    w1_ref: [blocks, Cm, C]   folded (conv1 * BN1) weights
    b1_ref: [blocks, Cm, 1]   folded biases
    w2_ref: [blocks, C, Cm]   folded (conv2 * BN2) weights
    b2_ref: [blocks, C, 1]    folded biases
    o_ref : [1, C, TN]
    """
    xt = x_ref[0]  # [C, TN], f32
    n_blocks = w1_ref.shape[0]
    # blocks is a small static count -> fully unrolled; the activation stays
    # resident on-chip (vregs/VMEM) across all blocks.
    for blk in range(n_blocks):
        h = jnp.dot(w1_ref[blk], xt, preferred_element_type=jnp.float32)
        h = _gelu_exact(h + b1_ref[blk])
        z = jnp.dot(w2_ref[blk], h, preferred_element_type=jnp.float32)
        xt = _gelu_exact(z + b2_ref[blk] + xt)
    o_ref[0] = xt.astype(o_ref.dtype)


def _pick_tile_n(n, c, c_mid, bytes_per=4, vmem_budget=16 * 1024 * 1024):
    """Largest lane-aligned TN that divides N and keeps the working set in VMEM.

    Per lane-column budget: in/out tiles double-buffered by the pipeline
    (2x each) plus the resident activation / hidden intermediates.
    """
    per_col = (4 * c + 2 * c_mid + 2 * c) * bytes_per
    cap = max(128, (vmem_budget // max(per_col, 1)) // 128 * 128)
    if n <= cap:
        return n                      # whole row in one tile (always legal)
    if n % 128 != 0:
        return n                      # full-dim block is the only legal option
    best = 128
    t = 256
    while t <= cap:
        if n % t == 0:
            best = t
        t += 128
    return best


def pos_extraction_forward(x, params):
    """x: [B, C, N] (same layout as the PyTorch module). Returns [B, C, N]."""
    B, C, N = x.shape
    blocks, Cm, _ = params["w1"].shape
    TN = _pick_tile_n(N, C, Cm)
    grid = (B, N // TN)
    b1 = params["b1"].reshape(blocks, Cm, 1)
    b2 = params["b2"].reshape(blocks, C, 1)

    flops = 4 * B * N * blocks * C * Cm                    # two matmuls / block
    transcendentals = B * N * blocks * (C + Cm)            # one erf per GELU elem
    bytes_accessed = (2 * B * C * N                        # x in + y out
                      + 2 * blocks * C * Cm                # w1 + w2
                      + blocks * (C + Cm)) * 4             # biases

    return pl.pallas_call(
        _pos_extraction_kernel,
        out_shape=jax.ShapeDtypeStruct((B, C, N), x.dtype),
        grid=grid,
        in_specs=[
            pl.BlockSpec((1, C, TN), lambda b, n: (b, 0, n)),
            pl.BlockSpec((blocks, Cm, C), lambda b, n: (0, 0, 0)),
            pl.BlockSpec((blocks, Cm, 1), lambda b, n: (0, 0, 0)),
            pl.BlockSpec((blocks, C, Cm), lambda b, n: (0, 0, 0)),
            pl.BlockSpec((blocks, C, 1), lambda b, n: (0, 0, 0)),
        ],
        out_specs=pl.BlockSpec((1, C, TN), lambda b, n: (b, 0, n)),
        compiler_params=pltpu.CompilerParams(
            dimension_semantics=("parallel", "parallel"),
            vmem_limit_bytes=32 * 1024 * 1024,
        ),
        cost_estimate=pl.CostEstimate(
            flops=flops,
            transcendentals=transcendentals,
            bytes_accessed=bytes_accessed,
        ),
    )(x, params["w1"], b1, params["w2"], b2)


# ---------------- parameter construction (deterministic, in-script) ----------


def _fold_conv_bn(w, b, gamma, beta, mean, var, eps=1e-5):
    """Fold eval-mode BatchNorm1d into a k=1 Conv1d.  w: [Cout, Cin], b: [Cout]."""
    scale = gamma / jnp.sqrt(var + eps)
    w_eff = scale[:, None] * w
    b_eff = scale * (b - mean) + beta
    return w_eff, b_eff


def make_pos_extraction_params(key, channels, blocks=1, res_expansion=1.0):
    c_mid = int(channels * res_expansion)
    w1s, b1s, w2s, b2s = [], [], [], []
    for blk in range(blocks):
        keys = jax.random.split(jax.random.fold_in(key, blk), 10)
        # Conv1d(channels -> c_mid, k=1) ([out, in, 1] -> [out, in]) + BN1.
        w1 = jax.random.normal(keys[0], (c_mid, channels), jnp.float32) * 0.2
        bias1 = jax.random.normal(keys[1], (c_mid,), jnp.float32) * 0.1
        g1 = 1.0 + 0.1 * jax.random.normal(keys[2], (c_mid,), jnp.float32)
        be1 = 0.1 * jax.random.normal(keys[3], (c_mid,), jnp.float32)
        m1 = 0.05 * jax.random.normal(keys[4], (c_mid,), jnp.float32)
        v1 = 1.0 + 0.1 * jax.nn.softplus(
            jax.random.normal(keys[5], (c_mid,), jnp.float32))
        # Conv1d(c_mid -> channels, k=1) + BN2.
        w2 = jax.random.normal(keys[6], (channels, c_mid), jnp.float32) * 0.2
        bias2 = jax.random.normal(keys[7], (channels,), jnp.float32) * 0.1
        g2 = 1.0 + 0.1 * jax.random.normal(keys[8], (channels,), jnp.float32)
        be2 = 0.1 * jax.random.normal(keys[9], (channels,), jnp.float32)
        m2 = jnp.zeros((channels,), jnp.float32)
        v2 = jnp.ones((channels,), jnp.float32)

        w1_eff, b1_eff = _fold_conv_bn(w1, bias1, g1, be1, m1, v1)
        w2_eff, b2_eff = _fold_conv_bn(w2, bias2, g2, be2, m2, v2)
        w1s.append(w1_eff)   # [Cm, C]
        b1s.append(b1_eff)   # [Cm]
        w2s.append(w2_eff)   # [C, Cm]
        b2s.append(b2_eff)   # [C]
    return dict(
        w1=jnp.stack(w1s),   # [blocks, Cm, C]
        b1=jnp.stack(b1s),   # [blocks, Cm]
        w2=jnp.stack(w2s),   # [blocks, C, Cm]
        b2=jnp.stack(b2s),   # [blocks, C]
    )


# ---------------- pure-JAX reference -----------------------------------------


def pos_extraction_reference(x, params):
    """Same math in plain JAX (channel-major), for a correctness check."""
    y = x
    blocks = params["w1"].shape[0]
    for blk in range(blocks):
        w1 = params["w1"][blk]
        b1 = params["b1"][blk]
        w2 = params["w2"][blk]
        b2 = params["b2"][blk]
        h = _gelu_exact(jnp.einsum("oc,bcn->bon", w1, y) + b1[None, :, None])
        z = jnp.einsum("co,bon->bcn", w2, h) + b2[None, :, None]
        y = _gelu_exact(z + y)
    return y


if __name__ == "__main__":
    key = jax.random.PRNGKey(0)
    k_x, k_p = jax.random.split(key)

    # input[b, d, g] per the module docstring: batch=2, channels=16, points=384
    B, C, N = 2, 16, 384
    blocks = 2
    x = jax.random.normal(k_x, (B, C, N), jnp.float32)

    params = make_pos_extraction_params(k_p, channels=C, blocks=blocks,
                                        res_expansion=1.0)

    out = pos_extraction_forward(x, params)
    out = jax.block_until_ready(out)

    ref = pos_extraction_reference(x, params)
    assert out.shape == (B, C, N)
    assert jnp.allclose(out, ref, atol=1e-4, rtol=1e-4), "mismatch vs reference"

    print("KERNEL_OK")
</pallas_src>

<mosaic_0001>
module attributes {stable_mosaic.version = 11 : i64} {
  func.func @_pos_extraction_kernel(%arg0: i32, %arg1: i32, %arg2: memref<1x16x384xf32, #tpu.memory_space<vmem>>, %arg3: memref<2x16x16xf32, #tpu.memory_space<vmem>>, %arg4: memref<2x16x1xf32, #tpu.memory_space<vmem>>, %arg5: memref<2x16x16xf32, #tpu.memory_space<vmem>>, %arg6: memref<2x16x1xf32, #tpu.memory_space<vmem>>, %arg7: memref<1x16x384xf32, #tpu.memory_space<vmem>>) attributes {dimension_semantics = [#tpu.dimension_semantics<parallel>, #tpu.dimension_semantics<parallel>], iteration_bounds = array<i64: 2, 1>, scalar_prefetch = 0 : i64, scratch_operands = 0 : i64, tpu.core_type = #tpu.core_type<tc>, window_params = [{transform_indices = @transform_0, window_bounds = array<i64: 1, 16, 384>}, {pipeline_mode = #tpu.pipeline_mode<synchronous>, transform_indices = @transform_1, window_bounds = array<i64: 2, 16, 16>}, {pipeline_mode = #tpu.pipeline_mode<synchronous>, transform_indices = @transform_2, window_bounds = array<i64: 2, 16, 1>}, {pipeline_mode = #tpu.pipeline_mode<synchronous>, transform_indices = @transform_3, window_bounds = array<i64: 2, 16, 16>}, {pipeline_mode = #tpu.pipeline_mode<synchronous>, transform_indices = @transform_4, window_bounds = array<i64: 2, 16, 1>}, {transform_indices = @transform_5, window_bounds = array<i64: 1, 16, 384>}]} {
    %c0 = arith.constant 0 : index
    %c0_0 = arith.constant 0 : index
    %c0_1 = arith.constant 0 : index
    %0 = vector.load %arg2[%c0, %c0_0, %c0_1] : memref<1x16x384xf32, #tpu.memory_space<vmem>>, vector<1x16x384xf32>
    %1 = vector.shape_cast %0 : vector<1x16x384xf32> to vector<16x384xf32>
    %c0_2 = arith.constant 0 : index
    %c0_3 = arith.constant 0 : index
    %c0_4 = arith.constant 0 : index
    %2 = vector.load %arg3[%c0_2, %c0_3, %c0_4] : memref<2x16x16xf32, #tpu.memory_space<vmem>>, vector<1x16x16xf32>
    %3 = vector.shape_cast %2 : vector<1x16x16xf32> to vector<16x16xf32>
    %cst = arith.constant dense<0.000000e+00> : vector<16x384xf32>
    %4 = tpu.matmul %3, %1, %cst {dimension_numbers = #tpu.dot_dimension_numbers<[1], [0], [0], [1], [0, 0, 1, 1], [], []>} : vector<16x16xf32>, vector<16x384xf32>, vector<16x384xf32> -> vector<16x384xf32>
    %c0_5 = arith.constant 0 : index
    %c0_6 = arith.constant 0 : index
    %c0_7 = arith.constant 0 : index
    %5 = vector.load %arg4[%c0_5, %c0_6, %c0_7] : memref<2x16x1xf32, #tpu.memory_space<vmem>>, vector<1x16x1xf32>
    %6 = vector.shape_cast %5 : vector<1x16x1xf32> to vector<16x1xf32>
    %7 = vector.broadcast %6 : vector<16x1xf32> to vector<16x384xf32>
    %8 = arith.addf %4, %7 : vector<16x384xf32>
    %cst_8 = arith.constant 5.000000e-01 : f32
    %9 = vector.broadcast %cst_8 : f32 to vector<16x384xf32>
    %10 = arith.mulf %9, %8 : vector<16x384xf32>
    %cst_9 = arith.constant 0.707106769 : f32
    %11 = vector.broadcast %cst_9 : f32 to vector<16x384xf32>
    %12 = arith.mulf %8, %11 : vector<16x384xf32>
    %13 = math.erf %12 : vector<16x384xf32>
    %cst_10 = arith.constant 1.000000e+00 : f32
    %14 = vector.broadcast %cst_10 : f32 to vector<16x384xf32>
    %15 = arith.addf %14, %13 : vector<16x384xf32>
    %16 = arith.mulf %10, %15 : vector<16x384xf32>
    %c0_11 = arith.constant 0 : index
    %c0_12 = arith.constant 0 : index
    %c0_13 = arith.constant 0 : index
    %17 = vector.load %arg5[%c0_11, %c0_12, %c0_13] : memref<2x16x16xf32, #tpu.memory_space<vmem>>, vector<1x16x16xf32>
    %18 = vector.shape_cast %17 : vector<1x16x16xf32> to vector<16x16xf32>
    %cst_14 = arith.constant dense<0.000000e+00> : vector<16x384xf32>
    %19 = tpu.matmul %18, %16, %cst_14 {dimension_numbers = #tpu.dot_dimension_numbers<[1], [0], [0], [1], [0, 0, 1, 1], [], []>} : vector<16x16xf32>, vector<16x384xf32>, vector<16x384xf32> -> vector<16x384xf32>
    %c0_15 = arith.constant 0 : index
    %c0_16 = arith.constant 0 : index
    %c0_17 = arith.constant 0 : index
    %20 = vector.load %arg6[%c0_15, %c0_16, %c0_17] : memref<2x16x1xf32, #tpu.memory_space<vmem>>, vector<1x16x1xf32>
    %21 = vector.shape_cast %20 : vector<1x16x1xf32> to vector<16x1xf32>
    %22 = vector.broadcast %21 : vector<16x1xf32> to vector<16x384xf32>
    %23 = arith.addf %19, %22 : vector<16x384xf32>
    %24 = arith.addf %23, %1 : vector<16x384xf32>
    %cst_18 = arith.constant 5.000000e-01 : f32
    %25 = vector.broadcast %cst_18 : f32 to vector<16x384xf32>
    %26 = arith.mulf %25, %24 : vector<16x384xf32>
    %cst_19 = arith.constant 0.707106769 : f32
    %27 = vector.broadcast %cst_19 : f32 to vector<16x384xf32>
    %28 = arith.mulf %24, %27 : vector<16x384xf32>
    %29 = math.erf %28 : vector<16x384xf32>
    %cst_20 = arith.constant 1.000000e+00 : f32
    %30 = vector.broadcast %cst_20 : f32 to vector<16x384xf32>
    %31 = arith.addf %30, %29 : vector<16x384xf32>
    %32 = arith.mulf %26, %31 : vector<16x384xf32>
    %c1 = arith.constant 1 : index
    %c0_21 = arith.constant 0 : index
    %c0_22 = arith.constant 0 : index
    %33 = vector.load %arg3[%c1, %c0_21, %c0_22] : memref<2x16x16xf32, #tpu.memory_space<vmem>>, vector<1x16x16xf32>
    %34 = vector.shape_cast %33 : vector<1x16x16xf32> to vector<16x16xf32>
    %cst_23 = arith.constant dense<0.000000e+00> : vector<16x384xf32>
    %35 = tpu.matmul %34, %32, %cst_23 {dimension_numbers = #tpu.dot_dimension_numbers<[1], [0], [0], [1], [0, 0, 1, 1], [], []>} : vector<16x16xf32>, vector<16x384xf32>, vector<16x384xf32> -> vector<16x384xf32>
    %c1_24 = arith.constant 1 : index
    %c0_25 = arith.constant 0 : index
    %c0_26 = arith.constant 0 : index
    %36 = vector.load %arg4[%c1_24, %c0_25, %c0_26] : memref<2x16x1xf32, #tpu.memory_space<vmem>>, vector<1x16x1xf32>
    %37 = vector.shape_cast %36 : vector<1x16x1xf32> to vector<16x1xf32>
    %38 = vector.broadcast %37 : vector<16x1xf32> to vector<16x384xf32>
    %39 = arith.addf %35, %38 : vector<16x384xf32>
    %cst_27 = arith.constant 5.000000e-01 : f32
    %40 = vector.broadcast %cst_27 : f32 to vector<16x384xf32>
    %41 = arith.mulf %40, %39 : vector<16x384xf32>
    %cst_28 = arith.constant 0.707106769 : f32
    %42 = vector.broadcast %cst_28 : f32 to vector<16x384xf32>
    %43 = arith.mulf %39, %42 : vector<16x384xf32>
    %44 = math.erf %43 : vector<16x384xf32>
    %cst_29 = arith.constant 1.000000e+00 : f32
    %45 = vector.broadcast %cst_29 : f32 to vector<16x384xf32>
    %46 = arith.addf %45, %44 : vector<16x384xf32>
    %47 = arith.mulf %41, %46 : vector<16x384xf32>
    %c1_30 = arith.constant 1 : index
    %c0_31 = arith.constant 0 : index
    %c0_32 = arith.constant 0 : index
    %48 = vector.load %arg5[%c1_30, %c0_31, %c0_32] : memref<2x16x16xf32, #tpu.memory_space<vmem>>, vector<1x16x16xf32>
    %49 = vector.shape_cast %48 : vector<1x16x16xf32> to vector<16x16xf32>
    %cst_33 = arith.constant dense<0.000000e+00> : vector<16x384xf32>
    %50 = tpu.matmul %49, %47, %cst_33 {dimension_numbers = #tpu.dot_dimension_numbers<[1], [0], [0], [1], [0, 0, 1, 1], [], []>} : vector<16x16xf32>, vector<16x384xf32>, vector<16x384xf32> -> vector<16x384xf32>
    %c1_34 = arith.constant 1 : index
    %c0_35 = arith.constant 0 : index
    %c0_36 = arith.constant 0 : index
    %51 = vector.load %arg6[%c1_34, %c0_35, %c0_36] : memref<2x16x1xf32, #tpu.memory_space<vmem>>, vector<1x16x1xf32>
    %52 = vector.shape_cast %51 : vector<1x16x1xf32> to vector<16x1xf32>
    %53 = vector.broadcast %52 : vector<16x1xf32> to vector<16x384xf32>
    %54 = arith.addf %50, %53 : vector<16x384xf32>
    %55 = arith.addf %54, %32 : vector<16x384xf32>
    %cst_37 = arith.constant 5.000000e-01 : f32
    %56 = vector.broadcast %cst_37 : f32 to vector<16x384xf32>
    %57 = arith.mulf %56, %55 : vector<16x384xf32>
    %cst_38 = arith.constant 0.707106769 : f32
    %58 = vector.broadcast %cst_38 : f32 to vector<16x384xf32>
    %59 = arith.mulf %55, %58 : vector<16x384xf32>
    %60 = math.erf %59 : vector<16x384xf32>
    %cst_39 = arith.constant 1.000000e+00 : f32
    %61 = vector.broadcast %cst_39 : f32 to vector<16x384xf32>
    %62 = arith.addf %61, %60 : vector<16x384xf32>
    %63 = arith.mulf %57, %62 : vector<16x384xf32>
    %c0_40 = arith.constant 0 : index
    %c0_41 = arith.constant 0 : index
    %c0_42 = arith.constant 0 : index
    %64 = vector.load %arg7[%c0_40, %c0_41, %c0_42] : memref<1x16x384xf32, #tpu.memory_space<vmem>>, vector<1x16x384xf32>
    %65 = vector.shape_cast %64 : vector<1x16x384xf32> to vector<16x384xf32>
    %66 = vector.shape_cast %63 : vector<16x384xf32> to vector<1x16x384xf32>
    tpu.vector_store %arg7[%c0_40, %c0_41, %c0_42], %66 {strides = array<i32>} : memref<1x16x384xf32, #tpu.memory_space<vmem>>, vector<1x16x384xf32>,
    return
  }
  func.func @transform_0(%arg0: i32, %arg1: i32) -> (i32, i32, i32) {
    %c0_i32 = arith.constant 0 : i32
    %c0_i32_0 = arith.constant 0 : i32
    return %arg0, %c0_i32, %arg1 : i32, i32, i32
  }
  func.func @transform_1(%arg0: i32, %arg1: i32) -> (i32, i32, i32) {
    %c0_i32 = arith.constant 0 : i32
    %c0_i32_0 = arith.constant 0 : i32
    %c0_i32_1 = arith.constant 0 : i32
    %c0_i32_2 = arith.constant 0 : i32
    return %c0_i32, %c0_i32_0, %c0_i32_1 : i32, i32, i32
  }
  func.func @transform_2(%arg0: i32, %arg1: i32) -> (i32, i32, i32) {
    %c0_i32 = arith.constant 0 : i32
    %c0_i32_0 = arith.constant 0 : i32
    %c0_i32_1 = arith.constant 0 : i32
    %c0_i32_2 = arith.constant 0 : i32
    return %c0_i32, %c0_i32_0, %c0_i32_1 : i32, i32, i32
  }
  func.func @transform_3(%arg0: i32, %arg1: i32) -> (i32, i32, i32) {
    %c0_i32 = arith.constant 0 : i32
    %c0_i32_0 = arith.constant 0 : i32
    %c0_i32_1 = arith.constant 0 : i32
    %c0_i32_2 = arith.constant 0 : i32
    return %c0_i32, %c0_i32_0, %c0_i32_1 : i32, i32, i32
  }
  func.func @transform_4(%arg0: i32, %arg1: i32) -> (i32, i32, i32) {
    %c0_i32 = arith.constant 0 : i32
    %c0_i32_0 = arith.constant 0 : i32
    %c0_i32_1 = arith.constant 0 : i32
    %c0_i32_2 = arith.constant 0 : i32
    return %c0_i32, %c0_i32_0, %c0_i32_1 : i32, i32, i32
  }
  func.func @transform_5(%arg0: i32, %arg1: i32) -> (i32, i32, i32) {
    %c0_i32 = arith.constant 0 : i32
    %c0_i32_0 = arith.constant 0 : i32
    return %arg0, %c0_i32, %arg1 : i32, i32, i32
  }
}

</mosaic_0001>

<bundles_post_ra>
// kernel: tpu_custom_call.1
= control target key start
LH: loop header
LB: loop body
LE: loop exit
PB: predicated region body
PF: predicated region fallthrough
CT: control target
= control target key end

     0   :  { %10 = vsyncpa [#allocation3], 0  ;;  %s1893_s0 = inlined_call_operand.hbm [shape: f32[2,16,384], index: 0, kind: input, shape index: {}]   ;;  %s1894_s1 = inlined_call_operand.vmem [shape: f32[2,16,16], index: 1, kind: input, shape index: {}]   ;;  %s1895_s2 = inlined_call_operand.vmem [shape: f32[2,16,1], index: 2, kind: input, shape index: {}]   ;;  %s1896_s3 = inlined_call_operand.vmem [shape: f32[2,16,16], index: 3, kind: input, shape index: {}]   ;;  %s1897_s4 = inlined_call_operand.vmem [shape: f32[2,16,1], index: 4, kind: input, shape index: {}]   ;;  %s1898_s5 = inlined_call_operand.hbm [shape: f32[2,16,384], index: 5, kind: output, shape index: {}]  }
   0x1   :  { %12 = vsyncpa [#allocation3 + $0x1], 0 }
   0x2   :  { %13 = vsyncpa [#allocation4], 0 }
   0x3   :  { %15 = vsyncpa [#allocation4 + $0x1], 0  ;;  %s1586_s18 = smov 0   ;;  %s1588_s19 = smov 0  }
   0x4   :  { %s1590_s20 = smov 0   ;;  %s1592_s21 = smov 0  }
   0x5   :  { %s1594_s22 = smov 0   ;;  %s1596_s23 = smov 0  }
   0x6 LB: > { %s1203_s24 = sadd.s32 4294967295, %s1546_s23   ;;  %s1204_s25 = sadd.s32 4294967294, %s1546_s23   ;;  %s1546_s23 = sphi %s1596_s23, %s21_s23   ;;  %s1542_s22 = sphi %s1594_s22, %s1913_s22   ;;  %s1538_s21 = sphi %s1592_s21, %s1912_s21   ;;  %s1534_s20 = sphi %s1590_s20, %s1911_s20   ;;  %s1530_s19 = sphi %s1588_s19, %s1910_s19   ;;  %s1526_s18 = sphi %s1586_s18, %s1909_s18  }
   0x7   : > { %s33_s26 = sadd.s32 1, %s1542_s22  ;;  %s42_s27 = sadd.s32 1, %s1534_s20 }
   0x8   : > { %p35_p0 = scmp.ge.s32.totalorder %s33_s26, 2  ;;  %p49_p1 = scmp.ne.s32.totalorder %s1534_s20, %s1530_s19 }
   0x9   : > { %p50_p2 = scmp.eq.s32.totalorder %s1546_s23, 0  ;;  %p55_p3 = scmp.ne.s32.totalorder %s1530_s19, %s1526_s18 }
   0xa   : > { %s1915_s26 = smov (%p35_p0, %s33_s26), 0  ;;  %p56_p5 = scmp.eq.s32.totalorder %s1203_s24, 0 }
   0xb   : > { %p1627_p4 = por %p50_p2, %p49_p1  ;;  %s37_s29 = ssub.s32 %s1542_s22, %s1915_s26 }
   0xc   : > { %p165_p6 = scmp.eq.s32.totalorder %s1203_s24, 1  ;;  %p40_p7 = scmp.eq.s32.totalorder %s37_s29, 0 }
   0xd   : > { %p1633_p8 = por %p56_p5, %p55_p3  ;;  %p171_p10 = scmp.eq.s32.totalorder %s1204_s25, 1 }
   0xe   : > { %p1637_p9 = por %p165_p6, %p49_p1  ;;  %p1328_p13 = scmp.lt.s32.totalorder %s1546_s23, 2 }
   0xf   : > { %s1642_s7 = scalar_select %p40_p7, %s1534_s20, %s42_s27  }
  0x10   : > { %s1902_s6 = scalar_select %p1637_p9, 1, 0 }
  0x11   : > { %p1644_p11 = por %p171_p10, %p55_p3  ;;  %s203_s9 = sand.u32 1, %s1534_s20  }
  0x12   : > { %s1312_s10 = smul.u32 48, %s203_s9  ;;  %p1654_p0 = pnand %p1328_p13, %p1627_p4 }
  0x13   : > { %s1903_s8 = scalar_select %p1644_p11, 1, 0 }
  0x14   : > { %s1313_s11 = smul.u32 768, %s1542_s22  ;;  %s207_s16 = scalar_lea.vmem [#allocation2], %s1312_s10 }
  0x15   : > { %s216_s17 = sshll.u32 %s207_s16, 4  ;;  %s1666_s24 = scalar_lea.sflag [#allocation3], %s203_s9  ;;  %s1663_s17 = int_to_ptr.vmem [resolvable:$true] %s216_s17 }
  0x16   : > { %s1661_s15 = scalar_lea.hbm %s1893_s0, %s1313_s11  ;;  %p1436_p3 = pneg %p1654_p0 }
  0x17   : > { %s1434_s25 = scalar_lea.hbm %s1661_s15, 768  ;;  %s1439_s29 = scalar_lea.hbm %s1893_s0, 1536 }
  0x18   : > { %p1435_p2 = scmp.ne.s32.totalorder %s1661_s15, %s1434_s25  ;;  %p1440_p6 = scmp.lt.u32.totalorder %s1661_s15, %s1893_s0 }
  0x19   : > { %p1441_p7 = scmp.lt.u32.totalorder %s1439_s29, %s1434_s25  ;;  %p1443_p13 = scmp.lt.u32.totalorder %s1434_s25, %s1661_s15 }
  0x1a   : > { %p1437_p4 = pnand %p1436_p3, %p1435_p2 }
  0x1b   : > { %p1442_p10 = por %p1441_p7, %p1440_p6 }
  0x1c   : > { %p1438_p5 = pneg %p1437_p4 }
  0x1d   : > { %p1444_p12 = por %p1443_p13, %p1442_p10 }
  0x1f   : > { %p1445_p1 = pnand %p1444_p12, %p1438_p5 }
  0x21   : > { %1448 = shalt.err (!%p1445_p1)
}
  0x22   : > { %s1449_s9 = scalar_lea.vmem %s1663_s17, 768  ;;  %s1548_s13 = smov [#allocation2]  }
  0x23   : > { %p1450_p2 = scmp.ne.s32.totalorder %s1663_s17, %s1449_s9  ;;  %s1454_s14 = sshll.u32 %s1548_s13, 4  ;;  %s1455_s14 = int_to_ptr.vmem [resolvable:$false] %s1454_s14 }
  0x24   : > { %s1456_s16 = scalar_lea.vmem %s1455_s14, 1536  ;;  %p1457_p9 = scmp.lt.s32.totalorder %s1663_s17, %s1455_s14 }
  0x25   : > { %p1452_p4 = pnand %p1450_p2, %p1436_p3  ;;  %p1458_p6 = scmp.lt.s32.totalorder %s1456_s16, %s1449_s9 }
  0x27   : > { %p1453_p11 = pneg %p1452_p4  ;;  %p1459_p7 = por %p1458_p6, %p1457_p9 }
  0x29   : > { %p1460_p10 = pnand %p1459_p7, %p1453_p11 }
  0x2b   : > { %1463 = shalt.err (!%p1460_p10)
}
  0x2c   : > { %s1549_s25 = smov 384   ;;  %s1550_s27 = smov 24  }
  0x2d   : > { %1323 = dma.hbm_to_vmem [thread:$0]  (!%p1654_p0), %s1661_s15, 768, %s1663_s17, %s1666_s24, %s1549_s25, %s1549_s25, %s1550_s27  }
  0x2e   : > { %p224_p12 = scmp.lt.s32.totalorder %s1546_s23, 3  ;;  %p1905_p1 = scmp.ge.s32.totalorder %s1546_s23, 1 }
  0x30   : > { %p225_p3 = pnand %p1905_p1, %p224_p12 }
  0x31   : > { %s1698_s28 = sand.u32 (!%p225_p3), 1, %s1530_s19  }
  0x32   : > { %228 = sbr.rel (%p225_p3) target bundleno = 1047 (0x417), region = 40  ;;  %s231_s11 = scalar_lea.sflag (!%p225_p3), [#allocation3], %s1698_s28 }
  0x33   : > { %s1314_s29 = smul.u32 (!%p225_p3), 48, %s1698_s28 }
  0x35   : > { %s234_s10 = scalar_lea.vmem (!%p225_p3), [#allocation2], %s1314_s29 }
  0x39   : > { %1517 = dma.done.wait (%p1633_p8), %s231_s11, 768  }
  0x3a   : > { %1519 = vsyncadd (%p1633_p8), %s231_s11, 4294966528  ;;  %v1551_v0 = vmov 0.0   ;;  %v1552_v1 = vmov 0   ;;  %v1709_v2 = vld [vmem:[%s234_s10 + $0x8] sm:$0xff]  ;;  %v1711_v3 = vld [vmem:[%s234_s10 + $0x20] sm:$0xff]  ;;  %vm283_vm0 = vcmask 130048  }
  0x3b   : > { %354 = vmatprep.mubr.f32.mxu0 %v1551_v0  ;;  %1384 = vset.pattern.permute.xlu0 %v1552_v1  ;;  %v1713_v4 = vld [vmem:[%s234_s10 + $0x10] sm:$0xff]  ;;  %v1280_v5 = vpack.c.bf16 %v1711_v3, %v1709_v2  ;;  %v1717_v6 = vld [vmem:[%s234_s10 + $0x28] sm:$0xff]  ;;  %v1719_v7 = vld [vmem:[%s234_s10] sm:$0xff]  ;;  %s260_s13 = scalar_lea.vmem [#allocation5], %s1314_s29  ;;  %s1315_s14 = smul.u32 768, %s1538_s21 }
  0x3c   : > { %1385 = vset.pattern.permute.xlu1 %v1552_v1  ;;  %v1721_v8 = vld [vmem:[%s234_s10 + $0x18] sm:$0xff]  ;;  %v1284_v9 = vpack.c.bf16 %v1717_v6, %v1713_v4  ;;  %v269_v11 = vld [vmem:[%s1894_s1] sm:$0xff]  ;;  %v1219_v15 = vld [vmem:[%s1895_s2 + $0x10] sm:$0xff]  ;;  %s1116_s16 = sshll.u32 %s260_s13, 4  ;;  %s1101_s21 = scalar_lea.sflag [#allocation4], %s1698_s28  ;;  %s1844_s16 = int_to_ptr.vmem [resolvable:$true] %s1116_s16 }
  0x3d   : > { %v1282_v10 = vpack.c.bf16 %v1721_v8, %v1719_v7  ;;  %v271_v12 = vld [vmem:[%s1895_s2] sm:$0xff]  ;;  %1281 = vmatprep.subr.bf16.mxu0 %v1280_v5  ;;  %1256 = vmatprep.mubr.msk.f32.mxu1 %vm283_vm0, %v269_v11  ;;  %v270_v13 = vld [vmem:[%s1894_s1 + $0x8] sm:$0xff]  ;;  %v1227_v16 = vld [vmem:[%s1897_s4 + $0x10] sm:$0xff]  ;;  %s1842_s27 = scalar_lea.hbm %s1898_s5, %s1315_s14  ;;  %s1464_s11 = scalar_lea.vmem %s1844_s16, 768 }
  0x3e   : > { %1285 = vmatprep.subr.bf16.mxu1 %v1284_v9  ;;  %275 = vperm.xlu0 %1384, %v271_v12   ;;  %v272_v14 = vld [vmem:[%s1895_s2 + $0x8] sm:$0xff]  ;;  %v1754_v17 = vld [vmem:[%s1896_s3] sm:$0xff]  ;;  %v1220_v20 = vld [vmem:[%s1895_s2 + $0x18] sm:$0xff]  ;;  %p1465_p8 = scmp.ne.s32.totalorder %s1844_s16, %s1464_s11  ;;  %p1906_p9 = scmp.ne.s32.totalorder %s1902_s6, 0 }
  0x3f   : > { %1283 = vmatpush1.bf16.msra.mxu0 %v1282_v10  ;;  %1287 = vmatpush3.bf16.msra.mxu1 %v1284_v9  ;;  %v474_v18 = vld [vmem:[%s1897_s4] sm:$0xff]  ;;  %v475_v19 = vld [vmem:[%s1897_s4 + $0x8] sm:$0xff]  ;;  %v1228_v21 = vld [vmem:[%s1897_s4 + $0x18] sm:$0xff]  ;;  %s1553_s10 = smov [#allocation5]  }
  0x40   : > { %478 = vperm.xlu1 %1385, %v474_v18   ;;  %v473_v12 = vld [vmem:[%s1896_s3 + $0x8] sm:$0xff]  ;;  %p1466_p11 = pnand %p1465_p8, %p1906_p9  ;;  %s1468_s30 = sshll.u32 %s1553_s10, 4  ;;  %s1469_s30 = int_to_ptr.vmem [resolvable:$false] %s1468_s30 }
  0x41   : > { %s1470_s12 = scalar_lea.vmem %s1469_s30, 1536  ;;  %p1471_p5 = scmp.lt.s32.totalorder %s1844_s16, %s1469_s30 }
  0x42   : > { %1209 = vmatmul.mubr.msk.f32.vlgmr.msra.gmra.mrb[0].mxu0 %vm283_vm0, %v269_v11  ;;  %1257 = vmatmul.mubr.msk.f32.vlgmr.msra.gmra.mrb[0].mxu1 %vm283_vm0, %v270_v13  ;;  %p1467_p0 = pneg %p1466_p11  ;;  %p1472_p13 = scmp.lt.s32.totalorder %s1470_s12, %s1464_s11 }
  0x43   : > { %360 = vmatprep.mubr.f32.mxu0 %v1551_v0  ;;  %280 = vperm.xlu0 %1384, %v272_v14  }
  0x44   : > { %556 = vmatprep.mubr.f32.mxu1 %v1551_v0  ;;  %483 = vperm.xlu1 %1385, %v475_v19   ;;  %p1473_p2 = por %p1472_p13, %p1471_p5 }
  0x46   : > { %1210 = vmatmul.mubr.msk.f32.gmra.mrb[2].mxu0 %vm283_vm0, %v270_v13  ;;  %v1782_v13 = vld [vmem:[%s1894_s1 + $0x10] sm:$0xff]  ;;  %p1474_p4 = pnand %p1473_p2, %p1467_p0 }
  0x47   : > { %688 = vperm.xlu0 %1384, %v1219_v15   ;;  %1263 = vmatprep.mubr.msk.f32.mxu0 %vm283_vm0, %v1754_v17 }
  0x48   : > { %693 = vperm.xlu1 %1385, %v1220_v20  }
  0x4b   : > { %892 = vperm.xlu0 %1384, %v1227_v16  }
  0x4c   : > { %897 = vperm.xlu1 %1385, %v1228_v21  }
  0xbd   : > { %v276_v22 = vpop.permute.xlu0 %275 }
  0xbf   : > { %v479_v14 = vpop.permute.xlu1 %478 }
  0xc2   : > { %v281_v23 = vpop.permute.xlu0 %280 }
  0xc3   : > { %v484_v15 = vpop.permute.xlu1 %483 }
 0x115   : > { %v356_v24 = vpop.f32.mrb[0].mxu0  ;;  %v1258_v26 = vpop.f32.mrb[0].mxu1 }
 0x116   : > { %v357_v25 = vadd.f32 %v356_v24, %v276_v22  ;;  %v358_v27 = vpop.f32.mrb[1].mxu0  ;;  %v439_v28 = vadd.f32 %v1258_v26, %v281_v23  ;;  %v433_v30 = vpop.f32.mrb[1].mxu1 }
 0x117   : > { %v359_v29 = vadd.f32 %v358_v27, %v276_v22  ;;  %v434_v32 = vadd.f32 %v433_v30, %v276_v22 }
 0x118   : > { %v448_v31 = vmul.f32 0.70710677, %v357_v25  ;;  %v453_v33 = vmul.f32 0.70710677, %v439_v28  ;;  %v447_v45 = vmul.f32 0.5, %v439_v28  ;;  %v442_v55 = vmul.f32 0.5, %v357_v25 }
 0x119   : > { %v449_v34 = vmul.f32 0.70710677, %v359_v29  ;;  %v450_v35 = vmul.f32 0.70710677, %v434_v32  ;;  %v362_v36 = vpop.f32.mrb[2].mxu0  ;;  %v444_v50 = vmul.f32 0.5, %v434_v32 }
 0x11a   : > { %1386 = verf.f32 %v448_v31  ;;  %v363_v37 = vadd.f32 %v362_v36, %v281_v23  ;;  %v364_v38 = vpop.f32.mrb[3].mxu0  ;;  %v443_v59 = vmul.f32 0.5, %v359_v29 }
 0x11b   : > { %1388 = verf.f32 %v453_v33  ;;  %v365_v39 = vadd.f32 %v364_v38, %v281_v23 }
 0x11c   : > { %1390 = verf.f32 %v449_v34  ;;  %v451_v40 = vmul.f32 0.70710677, %v363_v37  ;;  %v445_v57 = vmul.f32 0.5, %v363_v37 }
 0x11d   : > { %1392 = verf.f32 %v450_v35  ;;  %v452_v41 = vmul.f32 0.70710677, %v365_v39  ;;  %v446_v60 = vmul.f32 0.5, %v365_v39 }
 0x11e   : > { %1394 = verf.f32 %v451_v40 }
 0x11f   : > { %1396 = verf.f32 %v452_v41 }
 0x124   : > { %v1387_v42 = vpop.eup %1386 }
 0x125   : > { %v1389_v43 = vpop.eup %1388  ;;  %v460_v48 = vadd.f32 1.0, %v1387_v42 }
 0x126   : > { %v1391_v44 = vpop.eup %1390  ;;  %v465_v46 = vadd.f32 1.0, %v1389_v43 }
 0x127   : > { %v1393_v47 = vpop.eup %1392  ;;  %v461_v53 = vadd.f32 1.0, %v1391_v44  ;;  %v466_v62 = vmul.f32 %v460_v48, %v442_v55 }
 0x128   : > { %v471_v49 = vmul.f32 %v465_v46, %v447_v45  ;;  %v462_v51 = vadd.f32 1.0, %v1393_v47  ;;  %v1395_v52 = vpop.eup %1394 }
 0x129   : > { %v1397_v54 = vpop.eup %1396  ;;  %v463_v58 = vadd.f32 1.0, %v1395_v52  ;;  %v467_v5 = vmul.f32 %v461_v53, %v443_v59 }
 0x12a   : > { %v468_v56 = vmul.f32 %v462_v51, %v444_v50  ;;  %v464_v61 = vadd.f32 1.0, %v1397_v54  ;;  %v1218_v54 = vld [vmem:[%s1894_s1 + $0x18] sm:$0xff] }
 0x12b   : > { %v469_v63 = vmul.f32 %v463_v58, %v445_v57 }
 0x12c   : > { %v1292_v1 = vpack.c.bf16 %v471_v49, %v468_v56  ;;  %v470_v9 = vmul.f32 %v464_v61, %v446_v60 }
 0x12d   : > { %v1290_v10 = vpack.c.bf16 %v469_v63, %v466_v62  ;;  %v1225_v62 = vld [vmem:[%s1896_s3 + $0x10] sm:$0xff]  ;;  %v694_v63 = vpop.permute.xlu1 %693 }
 0x12e   : > { %1293 = vmatprep.subr.bf16.mxu0 %v1292_v1  ;;  %v1288_v11 = vpack.c.bf16 %v470_v9, %v467_v5  ;;  %v689_v5 = vpop.permute.xlu0 %688 }
 0x12f   : > { %1295 = vmatpush3.bf16.msra.mxu0 %v1292_v1 }
 0x130   : > { %1289 = vmatprep.subr.bf16.mxu1 %v1288_v11 }
 0x131   : > { %1291 = vmatpush1.bf16.msra.mxu1 %v1290_v10 }
 0x132   : > { %1264 = vmatmul.mubr.msk.f32.vlgmr.msra.gmra.mrb[4].mxu0 %vm283_vm0, %v473_v12 }
 0x133   : > { %766 = vmatprep.mubr.f32.mxu0 %v1551_v0 }
 0x134   : > { %1213 = vmatmul.mubr.msk.f32.vlgmr.msra.gmra.mrb[2].mxu1 %vm283_vm0, %v1754_v17 }
 0x135   : > { %562 = vmatprep.mubr.f32.mxu1 %v1551_v0 }
 0x138   : > { %1214 = vmatmul.mubr.msk.f32.gmra.mrb[4].mxu1 %vm283_vm0, %v473_v12 }
 0x139   : > { %1270 = vmatprep.mubr.msk.f32.mxu1 %vm283_vm0, %v1782_v13 }
 0x205   : > { %v1265_v16 = vpop.f32.mrb[4].mxu0 }
 0x206   : > { %v641_v18 = vadd.f32 %v1265_v16, %v484_v15  ;;  %v635_v19 = vpop.f32.mrb[5].mxu0 }
 0x207   : > { %v636_v20 = vadd.f32 %v635_v19, %v479_v14  ;;  %v558_v21 = vpop.f32.mrb[2].mxu1 }
 0x208   : > { %v649_v17 = vadd.f32 %v641_v18, %v1717_v6  ;;  %v559_v23 = vadd.f32 %v558_v21, %v479_v14  ;;  %v560_v24 = vpop.f32.mrb[3].mxu1 }
 0x209   : > { %v646_v22 = vadd.f32 %v636_v20, %v1713_v4  ;;  %v561_v26 = vadd.f32 %v560_v24, %v479_v14 }
 0x20a   : > { %v661_v25 = vmul.f32 0.70710677, %v649_v17  ;;  %v644_v28 = vadd.f32 %v559_v23, %v1719_v7 }
 0x20b   : > { %v658_v27 = vmul.f32 0.70710677, %v646_v22  ;;  %v645_v29 = vadd.f32 %v561_v26, %v1709_v2  ;;  %v564_v30 = vpop.f32.mrb[4].mxu1  ;;  %v655_v2 = vmul.f32 0.5, %v649_v17  ;;  %v652_v40 = vmul.f32 0.5, %v646_v22 }
 0x20c   : > { %1398 = verf.f32 %v661_v25  ;;  %v656_v31 = vmul.f32 0.70710677, %v644_v28  ;;  %v565_v32 = vadd.f32 %v564_v30, %v484_v15  ;;  %v566_v33 = vpop.f32.mrb[5].mxu1  ;;  %v650_v55 = vmul.f32 0.5, %v644_v28 }
 0x20d   : > { %1400 = verf.f32 %v658_v27  ;;  %v657_v34 = vmul.f32 0.70710677, %v645_v29  ;;  %v567_v6 = vadd.f32 %v566_v33, %v484_v15  ;;  %v651_v51 = vmul.f32 0.5, %v645_v29 }
 0x20e   : > { %v647_v35 = vadd.f32 %v565_v32, %v1721_v8 }
 0x20f   : > { %1402 = verf.f32 %v657_v34  ;;  %v648_v4 = vadd.f32 %v567_v6, %v1711_v3 }
 0x210   : > { %1404 = verf.f32 %v656_v31  ;;  %v659_v36 = vmul.f32 0.70710677, %v647_v35  ;;  %v653_v49 = vmul.f32 0.5, %v647_v35 }
 0x211   : > { %v660_v37 = vmul.f32 0.70710677, %v648_v4  ;;  %v654_v52 = vmul.f32 0.5, %v648_v4  ;;  %v1226_v4 = vld [vmem:[%s1896_s3 + $0x18] sm:$0xff] }
 0x212   : > { %1406 = verf.f32 %v659_v36 }
 0x213   : > { %1408 = verf.f32 %v660_v37 }
 0x216   : > { %v1399_v7 = vpop.eup %1398 }
 0x217   : > { %v1401_v38 = vpop.eup %1400  ;;  %v673_v39 = vadd.f32 1.0, %v1399_v7 }
 0x218   : > { %v670_v41 = vadd.f32 1.0, %v1401_v38 }
 0x219   : > { %v1792_v42 = vmul.f32 %v673_v39, %v655_v2  ;;  %v1403_v43 = vpop.eup %1402 }
 0x21a   : > { %v1794_v44 = vmul.f32 %v670_v41, %v652_v40  ;;  %v1405_v8 = vpop.eup %1404  ;;  %v669_v46 = vadd.f32 1.0, %v1403_v43 }
 0x21b   : > { %v668_v48 = vadd.f32 1.0, %v1405_v8 }
 0x21c   : > { %v1300_v3 = vpack.c.bf16 %v1792_v42, %v1794_v44  ;;  %v1407_v45 = vpop.eup %1406  ;;  %v1803_v57 = vmul.f32 %v669_v46, %v651_v51 }
 0x21d   : > { %v1409_v47 = vpop.eup %1408  ;;  %v671_v50 = vadd.f32 1.0, %v1407_v45  ;;  %v1807_v59 = vmul.f32 %v668_v48, %v650_v55 }
 0x21e   : > { %1301 = vmatprep.subr.bf16.mxu1 %v1300_v3  ;;  %v672_v53 = vadd.f32 1.0, %v1409_v47 }
 0x21f   : > { %1303 = vmatpush3.bf16.msra.mxu1 %v1300_v3  ;;  %v1801_v56 = vmul.f32 %v671_v50, %v653_v49  ;;  %v898_v50 = vpop.permute.xlu1 %897 }
 0x220   : > { %v1805_v58 = vmul.f32 %v672_v53, %v654_v52  ;;  %v893_v52 = vpop.permute.xlu0 %892 }
 0x221   : > { %v1298_v61 = vpack.c.bf16 %v1801_v56, %v1807_v59 }
 0x222   : > { %1271 = vmatmul.mubr.msk.f32.vlgmr.msra.gmra.mrb[6].mxu1 %vm283_vm0, %v1218_v54  ;;  %v1296_v60 = vpack.c.bf16 %v1805_v58, %v1803_v57 }
 0x223   : > { %970 = vmatprep.mubr.f32.mxu1 %v1551_v0 }
 0x224   : > { %1297 = vmatprep.subr.bf16.mxu0 %v1296_v60 }
 0x225   : > { %1299 = vmatpush1.bf16.msra.mxu0 %v1298_v61 }
 0x228   : > { %1221 = vmatmul.mubr.msk.f32.vlgmr.msra.gmra.mrb[6].mxu0 %vm283_vm0, %v1782_v13 }
 0x229   : > { %772 = vmatprep.mubr.f32.mxu0 %v1551_v0 }
 0x22c   : > { %1222 = vmatmul.mubr.msk.f32.gmra.mrb[8].mxu0 %vm283_vm0, %v1218_v54 }
 0x22d   : > { %1277 = vmatprep.mubr.msk.f32.mxu0 %vm283_vm0, %v1225_v62 }
 0x2f5   : > { %v1272_v1 = vpop.f32.mrb[6].mxu1 }
 0x2f6   : > { %v851_v9 = vadd.f32 %v1272_v1, %v694_v63  ;;  %v845_v10 = vpop.f32.mrb[7].mxu1 }
 0x2f7   : > { %v846_v11 = vadd.f32 %v845_v10, %v689_v5 }
 0x2f8   : > { %v865_v12 = vmul.f32 0.70710677, %v851_v9  ;;  %v859_v28 = vmul.f32 0.5, %v851_v9 }
 0x2f9   : > { %v862_v14 = vmul.f32 0.70710677, %v846_v11  ;;  %v856_v30 = vmul.f32 0.5, %v846_v11 }
 0x2fa   : > { %1410 = verf.f32 %v865_v12 }
 0x2fb   : > { %1412 = verf.f32 %v862_v14  ;;  %v768_v13 = vpop.f32.mrb[6].mxu0 }
 0x2fc   : > { %v769_v15 = vadd.f32 %v768_v13, %v689_v5  ;;  %v770_v16 = vpop.f32.mrb[7].mxu0 }
 0x2fd   : > { %v771_v18 = vadd.f32 %v770_v16, %v689_v5 }
 0x2fe   : > { %v860_v19 = vmul.f32 0.70710677, %v769_v15  ;;  %v854_v2 = vmul.f32 0.5, %v769_v15 }
 0x2ff   : > { %v861_v20 = vmul.f32 0.70710677, %v771_v18  ;;  %v774_v17 = vpop.f32.mrb[8].mxu0  ;;  %v855_v41 = vmul.f32 0.5, %v771_v18 }
 0x300   : > { %1414 = verf.f32 %v860_v19  ;;  %v775_v21 = vadd.f32 %v774_v17, %v694_v63  ;;  %v776_v22 = vpop.f32.mrb[9].mxu0 }
 0x301   : > { %1416 = verf.f32 %v861_v20  ;;  %v777_v23 = vadd.f32 %v776_v22, %v694_v63 }
 0x302   : > { %v863_v24 = vmul.f32 0.70710677, %v775_v21  ;;  %v857_v39 = vmul.f32 0.5, %v775_v21 }
 0x303   : > { %v864_v26 = vmul.f32 0.70710677, %v777_v23  ;;  %v858_v43 = vmul.f32 0.5, %v777_v23 }
 0x304   : > { %v1411_v25 = vpop.eup %1410  ;;  %1418 = verf.f32 %v863_v24 }
 0x305   : > { %v1413_v27 = vpop.eup %1412  ;;  %v877_v29 = vadd.f32 1.0, %v1411_v25  ;;  %1420 = verf.f32 %v864_v26 }
 0x306   : > { %v874_v31 = vadd.f32 1.0, %v1413_v27 }
 0x307   : > { %v883_v32 = vmul.f32 %v877_v29, %v859_v28 }
 0x308   : > { %v880_v33 = vmul.f32 %v874_v31, %v856_v30 }
 0x30a   : > { %v1308_v34 = vpack.c.bf16 %v883_v32, %v880_v33  ;;  %v1415_v6 = vpop.eup %1414 }
 0x30b   : > { %v1417_v35 = vpop.eup %1416  ;;  %v872_v36 = vadd.f32 1.0, %v1415_v6 }
 0x30c   : > { %1309 = vmatprep.subr.bf16.mxu0 %v1308_v34  ;;  %v873_v7 = vadd.f32 1.0, %v1417_v35 }
 0x30d   : > { %1311 = vmatpush3.bf16.msra.mxu0 %v1308_v34  ;;  %v878_v3 = vmul.f32 %v872_v36, %v854_v2 }
 0x30e   : > { %v1419_v37 = vpop.eup %1418  ;;  %v879_v46 = vmul.f32 %v873_v7, %v855_v41 }
 0x30f   : > { %v1421_v38 = vpop.eup %1420  ;;  %v875_v40 = vadd.f32 1.0, %v1419_v37 }
 0x310   : > { %1278 = vmatmul.mubr.msk.f32.vlgmr.msra.gmra.mrb[10].mxu0 %vm283_vm0, %v1226_v4  ;;  %v876_v8 = vadd.f32 1.0, %v1421_v38 }
 0x311   : > { %v881_v45 = vmul.f32 %v875_v40, %v857_v39 }
 0x312   : > { %v882_v47 = vmul.f32 %v876_v8, %v858_v43 }
 0x313   : > { %v1306_v48 = vpack.c.bf16 %v881_v45, %v878_v3 }
 0x314   : > { %v1304_v49 = vpack.c.bf16 %v882_v47, %v879_v46 }
 0x316   : > { %1305 = vmatprep.subr.bf16.mxu1 %v1304_v49 }
 0x317   : > { %1307 = vmatpush1.bf16.msra.mxu1 %v1306_v48 }
 0x31a   : > { %1229 = vmatmul.mubr.msk.f32.vlgmr.msra.gmra.mrb[8].mxu1 %vm283_vm0, %v1225_v62 }
 0x31b   : > { %976 = vmatprep.mubr.f32.mxu1 %v1551_v0 }
 0x31e   : > { %1230 = vmatmul.mubr.msk.f32.gmra.mrb[10].mxu1 %vm283_vm0, %v1226_v4 }
 0x3e3   : > { %v1279_v51 = vpop.f32.mrb[10].mxu0 }
 0x3e4   : > { %v1055_v53 = vadd.f32 %v1279_v51, %v898_v50  ;;  %v1049_v54 = vpop.f32.mrb[11].mxu0 }
 0x3e5   : > { %v1050_v55 = vadd.f32 %v1049_v54, %v893_v52 }
 0x3e6   : > { %v1063_v60 = vadd.f32 %v1055_v53, %v1792_v42 }
 0x3e7   : > { %v1060_v61 = vadd.f32 %v1050_v55, %v1794_v44 }
 0x3e8   : > { %v1075_v63 = vmul.f32 0.70710677, %v1063_v60  ;;  %v1069_v19 = vmul.f32 0.5, %v1063_v60 }
 0x3e9   : > { %v1072_v1 = vmul.f32 0.70710677, %v1060_v61  ;;  %v1066_v21 = vmul.f32 0.5, %v1060_v61 }
 0x3ea   : > { %1422 = verf.f32 %v1075_v63 }
 0x3eb   : > { %1424 = verf.f32 %v1072_v1 }
 0x3ed   : > { %v972_v5 = vpop.f32.mrb[8].mxu1 }
 0x3ee   : > { %v973_v62 = vadd.f32 %v972_v5, %v893_v52  ;;  %v974_v9 = vpop.f32.mrb[9].mxu1 }
 0x3ef   : > { %v975_v0 = vadd.f32 %v974_v9, %v893_v52 }
 0x3f0   : > { %v1058_v10 = vadd.f32 %v973_v62, %v1807_v59 }
 0x3f1   : > { %v1059_v11 = vadd.f32 %v975_v0, %v1803_v57  ;;  %v978_v12 = vpop.f32.mrb[10].mxu1 }
 0x3f2   : > { %v1070_v14 = vmul.f32 0.70710677, %v1058_v10  ;;  %v979_v13 = vadd.f32 %v978_v12, %v898_v50  ;;  %v980_v15 = vpop.f32.mrb[11].mxu1  ;;  %v1064_v28 = vmul.f32 0.5, %v1058_v10 }
 0x3f3   : > { %v1071_v42 = vmul.f32 0.70710677, %v1059_v11  ;;  %v981_v44 = vadd.f32 %v980_v15, %v898_v50  ;;  %v1065_v29 = vmul.f32 0.5, %v1059_v11 }
 0x3f4   : > { %v1423_v16 = vpop.eup %1422  ;;  %1426 = verf.f32 %v1070_v14  ;;  %v1061_v17 = vadd.f32 %v979_v13, %v1801_v56 }
 0x3f5   : > { %v1425_v18 = vpop.eup %1424  ;;  %v1087_v20 = vadd.f32 1.0, %v1423_v16  ;;  %1428 = verf.f32 %v1071_v42  ;;  %v1062_v59 = vadd.f32 %v981_v44, %v1805_v58 }
 0x3f6   : > { %v1084_v22 = vadd.f32 1.0, %v1425_v18  ;;  %v1073_v23 = vmul.f32 0.70710677, %v1061_v17  ;;  %v1067_v34 = vmul.f32 0.5, %v1061_v17 }
 0x3f7   : > { %v1093_v57 = vmul.f32 %v1087_v20, %v1069_v19  ;;  %v1074_v25 = vmul.f32 0.70710677, %v1062_v59  ;;  %v1068_v35 = vmul.f32 0.5, %v1062_v59 }
 0x3f8   : > { %v1090_v24 = vmul.f32 %v1084_v22, %v1066_v21  ;;  %1430 = verf.f32 %v1073_v23 }
 0x3f9   : > { %1099 = vst [vmem:[%s260_s13 + $0x28] sm:$0xff] %v1093_v57  ;;  %1432 = verf.f32 %v1074_v25 }
 0x3fa   : > { %1096 = vst [vmem:[%s260_s13 + $0x10] sm:$0xff] %v1090_v24 }
 0x3fe   : > { %v1427_v26 = vpop.eup %1426 }
 0x3ff   : > { %v1429_v27 = vpop.eup %1428  ;;  %v1082_v56 = vadd.f32 1.0, %v1427_v26 }
 0x400   : > { %v1083_v30 = vadd.f32 1.0, %v1429_v27 }
 0x401   : > { %v1088_v31 = vmul.f32 %v1082_v56, %v1064_v28 }
 0x402   : > { %v1431_v58 = vpop.eup %1430  ;;  %v1089_v32 = vmul.f32 %v1083_v30, %v1065_v29 }
 0x403   : > { %v1433_v33 = vpop.eup %1432  ;;  %1094 = vst [vmem:[%s260_s13] sm:$0xff] %v1088_v31  ;;  %v1085_v6 = vadd.f32 1.0, %v1431_v58 }
 0x404   : > { %1095 = vst [vmem:[%s260_s13 + $0x8] sm:$0xff] %v1089_v32  ;;  %v1086_v4 = vadd.f32 1.0, %v1433_v33 }
 0x405   : > { %v1091_v36 = vmul.f32 %v1085_v6, %v1067_v34 }
 0x406   : > { %v1092_v37 = vmul.f32 %v1086_v4, %v1068_v35 }
 0x407   : > { %1097 = vst [vmem:[%s260_s13 + $0x18] sm:$0xff] %v1091_v36 }
 0x408   : > { %1098 = vst [vmem:[%s260_s13 + $0x20] sm:$0xff] %v1092_v37 }
 0x409   : > { %1477 = shalt.err (!%p1474_p4)
}
 0x40a   : > { %s1478_s15 = scalar_lea.hbm %s1842_s27, 768  ;;  %s1482_s9 = scalar_lea.hbm %s1898_s5, 1536 }
 0x40b   : > { %p1479_p6 = scmp.ne.s32.totalorder %s1842_s27, %s1478_s15  ;;  %p1483_p12 = scmp.lt.u32.totalorder %s1842_s27, %s1898_s5 }
 0x40c   : > { %p1484_p1 = scmp.lt.u32.totalorder %s1482_s9, %s1478_s15  ;;  %p1486_p8 = scmp.lt.u32.totalorder %s1478_s15, %s1842_s27 }
 0x40d   : > { %p1480_p7 = pnand %p1479_p6, %p1906_p9 }
 0x40e   : > { %p1485_p3 = por %p1484_p1, %p1483_p12 }
 0x40f   : > { %p1481_p10 = pneg %p1480_p7 }
 0x410   : > { %p1487_p11 = por %p1486_p8, %p1485_p3 }
 0x412   : > { %p1488_p0 = pnand %p1487_p11, %p1481_p10 }
 0x414   : > { %1491 = shalt.err (!%p1488_p0)
}
 0x415   : > { %s1554_s29 = smov 384   ;;  %s1555_s25 = smov 24  }
 0x416   : > { %1318 = dma.vmem_to_hbm [thread:$0]  (%p1906_p9), %s1844_s16, 768, %s1842_s27, %s1101_s21, %s1554_s29, %s1554_s29, %s1555_s25  }
 0x417 PF: > { %s1131_s11 = sand.u32 1, %s1526_s18   ;;  %p1907_p5 = scmp.ne.s32.totalorder %s1903_s8, 0 }
 0x418   : > { %p1908_p13 = scmp.ge.s32.totalorder %s1546_s23, 2  ;;  %s1132_s10 = scalar_lea.sflag [#allocation4], %s1131_s11 }
 0x41a   : > { %p1325_p2 = pnand %p1908_p13, %p1907_p5 }
 0x41c   : > { %1521 = dma.done.wait (!%p1325_p2), %s1132_s10, 768  }
 0x41d   : > { %1523 = vsyncadd (!%p1325_p2), %s1132_s10, 4294966528  ;;  %s21_s23 = sadd.s32 1, %s1546_s23   ;;  %s1909_s18 = smov %s1530_s19 }
 0x41e   : > { %p18_p4 = scmp.ge.s32.totalorder %s21_s23, 4   ;;  %s1910_s19 = smov %s1534_s20 }
 0x41f   : > { %s1911_s20 = smov %s1642_s7  ;;  %s1912_s21 = smov %s1542_s22 }
 0x420   : > { %s1913_s22 = smov %s1915_s26  ;;  %20 = sbr.rel (!%p18_p4) target bundleno = 6 (0x6), region = 89 }
 0x427   :  { %1137 = vsyncpa [#allocation3], 1 }
 0x428   :  { %1139 = vsyncpa [#allocation3 + $0x1], 1 }
 0x429   :  { %1140 = vsyncpa [#allocation4], 1 }
 0x42a   :  { %1142 = vsyncpa [#allocation4 + $0x1], 1 }

</bundles_post_ra>
